<compile_context>
chip_gen: v5e
topology: v5e:2x2
jax: 0.10.0
libtpu: 0.0.40
codegen_flags: <defaults>
</compile_context>

<pallas_src>
import jax
import jax.numpy as jnp
from jax.experimental import pallas as pl
from jax.experimental.pallas import tpu as pltpu


# ---------------------------------------------------------------------------
# Kernel
# ---------------------------------------------------------------------------
def attention_kernel(feat_ref, hid_ref,
                     UwT_ref, WwT_ref, bias_ref, Aw_ref, Ab_ref,
                     alpha_ref, ctx_ref,
                     w_ah_sc, m_sc, l_sc, acc_sc, s_sc):
    """One (batch-tile, L-tile) grid step of additive attention.

    feat_ref : (Bt, Lt, E)  feature tile (native dtype, f32 or bf16)
    hid_ref  : (Bt, D)      hidden state for this batch tile
    UwT_ref  : (E, A)  pre-transposed U weight
    WwT_ref  : (D, A)  pre-transposed W weight
    bias_ref : (1, A)  folded bias  Ub + Wb  (L-invariant)
    Aw_ref   : (1, A)  A weight (row vector)       Ab_ref : (1, 1)
    alpha_ref: (Bt, L)  output, resident across the L grid axis
    ctx_ref  : (Bt, E)  output, resident across the L grid axis
    scratch  : w_ah (Bt,A), m (Bt,1), l (Bt,1), acc (Bt,E), scores (nL,Bt,Lt)
    """
    li = pl.program_id(1)
    nl = pl.num_programs(1)
    Bt, Lt, E = feat_ref.shape
    nl_static = s_sc.shape[0]          # == grid extent along L (Python int)

    # ---- per-batch-tile init (first L step only) --------------------------
    @pl.when(li == 0)
    def _init():
        # Hidden projection + folded (Ub + Wb) bias are L-invariant: compute
        # once, keep in VMEM scratch for the whole L sweep.
        w_ah_sc[...] = (
            jnp.dot(hid_ref[...], WwT_ref[...],
                    preferred_element_type=jnp.float32)
            + bias_ref[...].astype(jnp.float32))
        m_sc[...] = jnp.full(m_sc.shape, -jnp.inf, dtype=m_sc.dtype)
        l_sc[...] = jnp.zeros(l_sc.shape, dtype=l_sc.dtype)
        acc_sc[...] = jnp.zeros(acc_sc.shape, dtype=acc_sc.dtype)

    # ---- U projection: one tall matmul on the MXU -------------------------
    feat = feat_ref[...]                                   # native dtype -> MXU
    u_hs = jnp.dot(feat.reshape(Bt * Lt, E), UwT_ref[...],
                   preferred_element_type=jnp.float32)     # (Bt*Lt, A) f32
    u_hs = u_hs.reshape(Bt, Lt, -1)

    comb = jnp.tanh(u_hs + w_ah_sc[...][:, None, :])       # (Bt, Lt, A) f32

    # ---- A projection (N=1): VPU multiply + lane reduce, keep MXU free ----
    s = (jnp.sum(comb * Aw_ref[...].astype(jnp.float32), axis=-1)
         + Ab_ref[...].astype(jnp.float32))                # (Bt, Lt) f32

    # Stash raw scores so the exact alpha can be emitted on the last L step.
    s_sc[li] = s

    # ---- online-softmax update of the context accumulator -----------------
    m_prev = m_sc[...]
    m_new = jnp.maximum(m_prev, jnp.max(s, axis=1, keepdims=True))
    corr = jnp.exp(m_prev - m_new)                         # (Bt, 1)
    p = jnp.exp(s - m_new)                                 # (Bt, Lt)
    l_sc[...] = corr * l_sc[...] + jnp.sum(p, axis=1, keepdims=True)
    acc_sc[...] = (corr * acc_sc[...]
                   + jnp.sum(p[:, :, None] * feat.astype(jnp.float32), axis=1))
    m_sc[...] = m_new

    # ---- finalize on the last L step --------------------------------------
    @pl.when(li == nl - 1)
    def _finalize():
        denom = l_sc[...]
        inv = pl.reciprocal(denom, approx=True)            # EUP slot
        inv = inv * (2.0 - denom * inv)                    # 1 Newton step -> ~exact
        m_fin = m_sc[...]
        # alpha: exact softmax from the stashed raw scores; static, lane-aligned
        # per-block stores into the resident (Bt, L) output buffer.
        for i in range(nl_static):
            blk = jnp.exp(s_sc[i] - m_fin) * inv           # (Bt, Lt)
            alpha_ref[:, i * Lt:(i + 1) * Lt] = blk.astype(alpha_ref.dtype)
        ctx_ref[...] = (acc_sc[...] * inv).astype(ctx_ref.dtype)


# ---------------------------------------------------------------------------
# Wrapper
# ---------------------------------------------------------------------------
def _pick_batch_tile(B):
    # Block leading dim must divide B and be a multiple of 8 (or equal B),
    # since it is the second-to-last dim of the (Bt,D)/(Bt,L)/(Bt,E) blocks.
    if B % 8 == 0:
        return 8
    return B


def _pick_seq_tile(L, E, itemsize, b_tile):
    # Lt must divide L and be a multiple of 8 (or equal L). Prefer lane-dense
    # multiples of 128, sized so one feature tile stays ~<= 4 MiB (the pipeline
    # double-buffers it).
    budget = 4 * 1024 * 1024
    for cand in (1024, 512, 256, 128):
        if L > cand and L % cand == 0 and b_tile * cand * E * itemsize <= budget:
            return cand
    for cand in (128, 256, 512, 1024):
        if L > cand and L % cand == 0:
            return cand
    return L


def attention_forward(features, hidden_state, params, *, b_tile=None, l_tile=None):
    B, L, E = features.shape
    D = hidden_state.shape[1]
    A = params["Uw"].shape[0]
    itemsize = jnp.dtype(features.dtype).itemsize

    b_tile = _pick_batch_tile(B) if b_tile is None else b_tile
    l_tile = _pick_seq_tile(L, E, itemsize, b_tile) if l_tile is None else l_tile
    assert B % b_tile == 0 and (b_tile % 8 == 0 or b_tile == B)
    assert L % l_tile == 0 and (l_tile % 8 == 0 or l_tile == L)
    n_l = L // l_tile

    # Trace-time (free) prep: pre-transpose projection weights so in-kernel
    # matmuls are plain (M,K)@(K,N); fold the two L-invariant biases into one.
    UwT = params["Uw"].T                     # (E, A)
    WwT = params["Ww"].T                     # (D, A)
    bias = params["Ub"] + params["Wb"]       # (1, A)

    out_shapes = (
        jax.ShapeDtypeStruct((B, L), features.dtype),   # alpha
        jax.ShapeDtypeStruct((B, E), features.dtype),   # attention_weights
    )

    alpha, ctx = pl.pallas_call(
        attention_kernel,
        out_shape=out_shapes,
        grid_spec=pltpu.PrefetchScalarGridSpec(
            num_scalar_prefetch=0,
            grid=(B // b_tile, n_l),
            in_specs=[
                pl.BlockSpec((b_tile, l_tile, E), lambda b, l: (b, l, 0)),  # features
                pl.BlockSpec((b_tile, D), lambda b, l: (b, 0)),             # hidden
                pl.BlockSpec((E, A), lambda b, l: (0, 0)),                  # UwT
                pl.BlockSpec((D, A), lambda b, l: (0, 0)),                  # WwT
                pl.BlockSpec((1, A), lambda b, l: (0, 0)),                  # Ub+Wb
                pl.BlockSpec((1, A), lambda b, l: (0, 0)),                  # Aw
                pl.BlockSpec((1, 1), lambda b, l: (0, 0)),                  # Ab
            ],
            out_specs=[
                pl.BlockSpec((b_tile, L), lambda b, l: (b, 0)),             # alpha
                pl.BlockSpec((b_tile, E), lambda b, l: (b, 0)),             # ctx
            ],
            scratch_shapes=[
                pltpu.VMEM((b_tile, A), jnp.float32),            # w_ah (hidden proj)
                pltpu.VMEM((b_tile, 1), jnp.float32),            # running max
                pltpu.VMEM((b_tile, 1), jnp.float32),            # running denom
                pltpu.VMEM((b_tile, E), jnp.float32),            # ctx accumulator
                pltpu.VMEM((n_l, b_tile, l_tile), jnp.float32),  # raw scores row
            ],
        ),
        compiler_params=pltpu.CompilerParams(
            # Batch tiles are independent -> sharded across TensorCores; the L
            # axis carries the online-softmax state -> arbitrary.
            dimension_semantics=("parallel", "arbitrary"),
            # Lift the scoped-VMEM default while staying well under v7x's
            # 64 MiB physical VMEM.
            vmem_limit_bytes=48 * 1024 * 1024,
        ),
    )(features, hidden_state, UwT, WwT, bias, params["Aw"], params["Ab"])
    return alpha, ctx


# ---------------------------------------------------------------------------
# Params / reference / test
# ---------------------------------------------------------------------------
def init_params(key, encoder_dim, decoder_dim, attention_dim, dtype=jnp.float32):
    """Deterministic init; shapes match nn.Linear convention: weight (out, in)."""
    k = jax.random.split(key, 6)

    def lin(kw, kb, out_d, in_d):
        bound = 1.0 / jnp.sqrt(in_d)
        w = jax.random.uniform(kw, (out_d, in_d), dtype, -bound, bound)
        b = jax.random.uniform(kb, (1, out_d), dtype, -bound, bound)
        return w, b

    Uw, Ub = lin(k[0], k[1], attention_dim, encoder_dim)   # U: enc -> attn
    Ww, Wb = lin(k[2], k[3], attention_dim, decoder_dim)   # W: dec -> attn
    Aw, Ab = lin(k[4], k[5], 1, attention_dim)             # A: attn -> 1
    return {"Uw": Uw, "Ub": Ub, "Ww": Ww, "Wb": Wb, "Aw": Aw, "Ab": Ab}


def attention_reference(features, hidden_state, p):
    """Pure-JAX reference mirroring the PyTorch forward exactly."""
    u_hs = jnp.einsum("ble,ae->bla", features, p["Uw"]) + p["Ub"][0]
    w_ah = hidden_state @ p["Ww"].T + p["Wb"][0]
    comb = jnp.tanh(u_hs + w_ah[:, None, :])
    scores = jnp.einsum("bla,oa->blo", comb, p["Aw"])[..., 0] + p["Ab"][0, 0]
    alpha = jax.nn.softmax(scores, axis=1)
    ctx = jnp.sum(features * alpha[:, :, None], axis=1)
    return alpha, ctx


if __name__ == "__main__":
    B, L = 2, 8
    encoder_dim, decoder_dim, attention_dim = 32, 16, 32

    key = jax.random.PRNGKey(0)
    k_feat, k_hid, k_param = jax.random.split(key, 3)

    features = jax.random.normal(k_feat, (B, L, encoder_dim), jnp.float32)
    hidden_state = jax.random.normal(k_hid, (B, decoder_dim), jnp.float32)
    params = init_params(k_param, encoder_dim, decoder_dim, attention_dim)

    alpha, attn_w = attention_forward(features, hidden_state, params)
    jax.block_until_ready((alpha, attn_w))

    # sanity check against pure-JAX reference
    alpha_ref, attn_ref = attention_reference(features, hidden_state, params)
    assert jnp.allclose(alpha, alpha_ref, atol=1e-5, rtol=1e-4)
    assert jnp.allclose(attn_w, attn_ref, atol=1e-5, rtol=1e-4)

    print("KERNEL_OK")
</pallas_src>

<mosaic_0001>
module attributes {stable_mosaic.version = 11 : i64} {
  func.func @attention_kernel(%arg0: i32, %arg1: i32, %arg2: memref<2x8x32xf32, #tpu.memory_space<vmem>>, %arg3: memref<2x16xf32, #tpu.memory_space<vmem>>, %arg4: memref<32x32xf32, #tpu.memory_space<vmem>>, %arg5: memref<16x32xf32, #tpu.memory_space<vmem>>, %arg6: memref<1x32xf32, #tpu.memory_space<vmem>>, %arg7: memref<1x32xf32, #tpu.memory_space<vmem>>, %arg8: memref<1x1xf32, #tpu.memory_space<vmem>>, %arg9: memref<2x8xf32, #tpu.memory_space<vmem>>, %arg10: memref<2x32xf32, #tpu.memory_space<vmem>>, %arg11: memref<2x32xf32, #tpu.memory_space<vmem>>, %arg12: memref<2x1xf32, #tpu.memory_space<vmem>>, %arg13: memref<2x1xf32, #tpu.memory_space<vmem>>, %arg14: memref<2x32xf32, #tpu.memory_space<vmem>>, %arg15: memref<1x2x8xf32, #tpu.memory_space<vmem>>) attributes {dimension_semantics = [#tpu.dimension_semantics<parallel>, #tpu.dimension_semantics<arbitrary>], iteration_bounds = array<i64: 1, 1>, scalar_prefetch = 0 : i64, scratch_operands = 5 : i64, tpu.core_type = #tpu.core_type<tc>, window_params = [{transform_indices = @transform_0, window_bounds = array<i64: 2, 8, 32>}, {transform_indices = @transform_1, window_bounds = array<i64: 2, 16>}, {pipeline_mode = #tpu.pipeline_mode<synchronous>, transform_indices = @transform_2, window_bounds = array<i64: 32, 32>}, {pipeline_mode = #tpu.pipeline_mode<synchronous>, transform_indices = @transform_3, window_bounds = array<i64: 16, 32>}, {pipeline_mode = #tpu.pipeline_mode<synchronous>, transform_indices = @transform_4, window_bounds = array<i64: 1, 32>}, {pipeline_mode = #tpu.pipeline_mode<synchronous>, transform_indices = @transform_5, window_bounds = array<i64: 1, 32>}, {pipeline_mode = #tpu.pipeline_mode<synchronous>, transform_indices = @transform_6, window_bounds = array<i64: 1, 1>}, {transform_indices = @transform_7, window_bounds = array<i64: 2, 8>}, {transform_indices = @transform_8, window_bounds = array<i64: 2, 32>}]} {
    %c0_i32 = arith.constant 0 : i32
    %0 = arith.cmpi eq, %arg1, %c0_i32 : i32
    %1 = arith.extui %0 : i1 to i32
    %c0_i32_0 = arith.constant 0 : i32
    %2 = arith.cmpi ne, %1, %c0_i32_0 : i32
    scf.if %2 {
      %c0_31 = arith.constant 0 : index
      %c0_32 = arith.constant 0 : index
      %53 = vector.load %arg3[%c0_31, %c0_32] : memref<2x16xf32, #tpu.memory_space<vmem>>, vector<2x16xf32>
      %c0_33 = arith.constant 0 : index
      %c0_34 = arith.constant 0 : index
      %54 = vector.load %arg5[%c0_33, %c0_34] : memref<16x32xf32, #tpu.memory_space<vmem>>, vector<16x32xf32>
      %cst_35 = arith.constant dense<0.000000e+00> : vector<2x32xf32>
      %55 = tpu.matmul %53, %54, %cst_35 {dimension_numbers = #tpu.dot_dimension_numbers<[1], [0], [0], [1], [0, 0, 1, 1], [], []>} : vector<2x16xf32>, vector<16x32xf32>, vector<2x32xf32> -> vector<2x32xf32>
      %c0_36 = arith.constant 0 : index
      %c0_37 = arith.constant 0 : index
      %56 = vector.load %arg6[%c0_36, %c0_37] : memref<1x32xf32, #tpu.memory_space<vmem>>, vector<1x32xf32>
      %57 = vector.broadcast %56 : vector<1x32xf32> to vector<2x32xf32>
      %58 = arith.addf %55, %57 : vector<2x32xf32>
      %c0_38 = arith.constant 0 : index
      %c0_39 = arith.constant 0 : index
      %59 = vector.load %arg11[%c0_38, %c0_39] : memref<2x32xf32, #tpu.memory_space<vmem>>, vector<2x32xf32>
      tpu.vector_store %arg11[%c0_38, %c0_39], %58 {strides = array<i32>} : memref<2x32xf32, #tpu.memory_space<vmem>>, vector<2x32xf32>,
      %cst_40 = arith.constant 0xFF800000 : f32
      %60 = vector.broadcast %cst_40 : f32 to vector<2x1xf32>
      %c0_41 = arith.constant 0 : index
      %c0_42 = arith.constant 0 : index
      %61 = vector.load %arg12[%c0_41, %c0_42] : memref<2x1xf32, #tpu.memory_space<vmem>>, vector<2x1xf32>
      tpu.vector_store %arg12[%c0_41, %c0_42], %60 {strides = array<i32>} : memref<2x1xf32, #tpu.memory_space<vmem>>, vector<2x1xf32>,
      %cst_43 = arith.constant 0.000000e+00 : f32
      %62 = vector.broadcast %cst_43 : f32 to vector<2x1xf32>
      %c0_44 = arith.constant 0 : index
      %c0_45 = arith.constant 0 : index
      %63 = vector.load %arg13[%c0_44, %c0_45] : memref<2x1xf32, #tpu.memory_space<vmem>>, vector<2x1xf32>
      tpu.vector_store %arg13[%c0_44, %c0_45], %62 {strides = array<i32>} : memref<2x1xf32, #tpu.memory_space<vmem>>, vector<2x1xf32>,
      %cst_46 = arith.constant 0.000000e+00 : f32
      %64 = vector.broadcast %cst_46 : f32 to vector<2x32xf32>
      %c0_47 = arith.constant 0 : index
      %c0_48 = arith.constant 0 : index
      %65 = vector.load %arg14[%c0_47, %c0_48] : memref<2x32xf32, #tpu.memory_space<vmem>>, vector<2x32xf32>
      tpu.vector_store %arg14[%c0_47, %c0_48], %64 {strides = array<i32>} : memref<2x32xf32, #tpu.memory_space<vmem>>, vector<2x32xf32>,
    } else {
    }
    %c0 = arith.constant 0 : index
    %c0_1 = arith.constant 0 : index
    %c0_2 = arith.constant 0 : index
    %3 = vector.load %arg2[%c0, %c0_1, %c0_2] : memref<2x8x32xf32, #tpu.memory_space<vmem>>, vector<2x8x32xf32>
    %4 = vector.shape_cast %3 : vector<2x8x32xf32> to vector<16x32xf32>
    %c0_3 = arith.constant 0 : index
    %c0_4 = arith.constant 0 : index
    %5 = vector.load %arg4[%c0_3, %c0_4] : memref<32x32xf32, #tpu.memory_space<vmem>>, vector<32x32xf32>
    %cst = arith.constant dense<0.000000e+00> : vector<16x32xf32>
    %6 = tpu.matmul %4, %5, %cst {dimension_numbers = #tpu.dot_dimension_numbers<[1], [0], [0], [1], [0, 0, 1, 1], [], []>} : vector<16x32xf32>, vector<32x32xf32>, vector<16x32xf32> -> vector<16x32xf32>
    %7 = vector.shape_cast %6 : vector<16x32xf32> to vector<2x8x32xf32>
    %c0_5 = arith.constant 0 : index
    %c0_6 = arith.constant 0 : index
    %8 = vector.load %arg11[%c0_5, %c0_6] : memref<2x32xf32, #tpu.memory_space<vmem>>, vector<2x32xf32>
    %9 = vector.shape_cast %8 : vector<2x32xf32> to vector<2x1x32xf32>
    %10 = vector.broadcast %9 : vector<2x1x32xf32> to vector<2x8x32xf32>
    %11 = arith.addf %7, %10 : vector<2x8x32xf32>
    %12 = math.tanh %11 : vector<2x8x32xf32>
    %c0_7 = arith.constant 0 : index
    %c0_8 = arith.constant 0 : index
    %13 = vector.load %arg7[%c0_7, %c0_8] : memref<1x32xf32, #tpu.memory_space<vmem>>, vector<1x32xf32>
    %14 = vector.shape_cast %13 : vector<1x32xf32> to vector<1x1x32xf32>
    %15 = vector.broadcast %14 : vector<1x1x32xf32> to vector<2x8x32xf32>
    %16 = arith.mulf %12, %15 : vector<2x8x32xf32>
    %cst_9 = arith.constant dense<0.000000e+00> : vector<2x8xf32>
    %17 = vector.multi_reduction <add>, %16, %cst_9 [2] : vector<2x8x32xf32> to vector<2x8xf32>
    %c0_10 = arith.constant 0 : index
    %c0_11 = arith.constant 0 : index
    %18 = vector.load %arg8[%c0_10, %c0_11] : memref<1x1xf32, #tpu.memory_space<vmem>>, vector<1x1xf32>
    %19 = vector.broadcast %18 : vector<1x1xf32> to vector<2x8xf32>
    %20 = arith.addf %17, %19 : vector<2x8xf32>
    %21 = arith.index_cast %arg1 : i32 to index
    %c0_12 = arith.constant 0 : index
    %c0_13 = arith.constant 0 : index
    %22 = vector.load %arg15[%21, %c0_12, %c0_13] : memref<1x2x8xf32, #tpu.memory_space<vmem>>, vector<1x2x8xf32>
    %23 = vector.shape_cast %22 : vector<1x2x8xf32> to vector<2x8xf32>
    %24 = vector.shape_cast %20 : vector<2x8xf32> to vector<1x2x8xf32>
    tpu.vector_store %arg15[%21, %c0_12, %c0_13], %24 {strides = array<i32>} : memref<1x2x8xf32, #tpu.memory_space<vmem>>, vector<1x2x8xf32>,
    %c0_14 = arith.constant 0 : index
    %c0_15 = arith.constant 0 : index
    %25 = vector.load %arg12[%c0_14, %c0_15] : memref<2x1xf32, #tpu.memory_space<vmem>>, vector<2x1xf32>
    %cst_16 = arith.constant dense<0xFF800000> : vector<2xf32>
    %26 = vector.multi_reduction <maximumf>, %20, %cst_16 [1] : vector<2x8xf32> to vector<2xf32>
    %27 = vector.shape_cast %26 : vector<2xf32> to vector<2x1xf32>
    %28 = arith.maximumf %25, %27 : vector<2x1xf32>
    %29 = arith.subf %25, %28 : vector<2x1xf32>
    %30 = math.exp %29 : vector<2x1xf32>
    %31 = vector.broadcast %28 : vector<2x1xf32> to vector<2x8xf32>
    %32 = arith.subf %20, %31 : vector<2x8xf32>
    %33 = math.exp %32 : vector<2x8xf32>
    %c0_17 = arith.constant 0 : index
    %c0_18 = arith.constant 0 : index
    %34 = vector.load %arg13[%c0_17, %c0_18] : memref<2x1xf32, #tpu.memory_space<vmem>>, vector<2x1xf32>
    %35 = arith.mulf %30, %34 : vector<2x1xf32>
    %cst_19 = arith.constant dense<0.000000e+00> : vector<2xf32>
    %36 = vector.multi_reduction <add>, %33, %cst_19 [1] : vector<2x8xf32> to vector<2xf32>
    %37 = vector.shape_cast %36 : vector<2xf32> to vector<2x1xf32>
    %38 = arith.addf %35, %37 : vector<2x1xf32>
    %c0_20 = arith.constant 0 : index
    %c0_21 = arith.constant 0 : index
    %39 = vector.load %arg13[%c0_20, %c0_21] : memref<2x1xf32, #tpu.memory_space<vmem>>, vector<2x1xf32>
    tpu.vector_store %arg13[%c0_20, %c0_21], %38 {strides = array<i32>} : memref<2x1xf32, #tpu.memory_space<vmem>>, vector<2x1xf32>,
    %c0_22 = arith.constant 0 : index
    %c0_23 = arith.constant 0 : index
    %40 = vector.load %arg14[%c0_22, %c0_23] : memref<2x32xf32, #tpu.memory_space<vmem>>, vector<2x32xf32>
    %41 = vector.broadcast %30 : vector<2x1xf32> to vector<2x32xf32>
    %42 = arith.mulf %41, %40 : vector<2x32xf32>
    %43 = vector.shape_cast %33 : vector<2x8xf32> to vector<2x8x1xf32>
    %44 = vector.broadcast %43 : vector<2x8x1xf32> to vector<2x8x32xf32>
    %45 = arith.mulf %44, %3 : vector<2x8x32xf32>
    %cst_24 = arith.constant dense<0.000000e+00> : vector<2x32xf32>
    %46 = vector.multi_reduction <add>, %45, %cst_24 [1] : vector<2x8x32xf32> to vector<2x32xf32>
    %47 = arith.addf %42, %46 : vector<2x32xf32>
    %c0_25 = arith.constant 0 : index
    %c0_26 = arith.constant 0 : index
    %48 = vector.load %arg14[%c0_25, %c0_26] : memref<2x32xf32, #tpu.memory_space<vmem>>, vector<2x32xf32>
    tpu.vector_store %arg14[%c0_25, %c0_26], %47 {strides = array<i32>} : memref<2x32xf32, #tpu.memory_space<vmem>>, vector<2x32xf32>,
    %c0_27 = arith.constant 0 : index
    %c0_28 = arith.constant 0 : index
    %49 = vector.load %arg12[%c0_27, %c0_28] : memref<2x1xf32, #tpu.memory_space<vmem>>, vector<2x1xf32>
    tpu.vector_store %arg12[%c0_27, %c0_28], %28 {strides = array<i32>} : memref<2x1xf32, #tpu.memory_space<vmem>>, vector<2x1xf32>,
    %c0_i32_29 = arith.constant 0 : i32
    %50 = arith.cmpi eq, %arg1, %c0_i32_29 : i32
    %51 = arith.extui %50 : i1 to i32
    %c0_i32_30 = arith.constant 0 : i32
    %52 = arith.cmpi ne, %51, %c0_i32_30 : i32
    scf.if %52 {
      %c0_31 = arith.constant 0 : index
      %c0_32 = arith.constant 0 : index
      %53 = vector.load %arg13[%c0_31, %c0_32] : memref<2x1xf32, #tpu.memory_space<vmem>>, vector<2x1xf32>
      %54 = tpu.reciprocal %53 {approx = true} : vector<2x1xf32> -> vector<2x1xf32>
      %55 = arith.mulf %53, %54 : vector<2x1xf32>
      %cst_33 = arith.constant 2.000000e+00 : f32
      %56 = vector.broadcast %cst_33 : f32 to vector<2x1xf32>
      %57 = arith.subf %56, %55 : vector<2x1xf32>
      %58 = arith.mulf %54, %57 : vector<2x1xf32>
      %c0_34 = arith.constant 0 : index
      %c0_35 = arith.constant 0 : index
      %59 = vector.load %arg12[%c0_34, %c0_35] : memref<2x1xf32, #tpu.memory_space<vmem>>, vector<2x1xf32>
      %c0_36 = arith.constant 0 : index
      %c0_37 = arith.constant 0 : index
      %c0_38 = arith.constant 0 : index
      %60 = vector.load %arg15[%c0_36, %c0_37, %c0_38] : memref<1x2x8xf32, #tpu.memory_space<vmem>>, vector<1x2x8xf32>
      %61 = vector.shape_cast %60 : vector<1x2x8xf32> to vector<2x8xf32>
      %62 = vector.broadcast %59 : vector<2x1xf32> to vector<2x8xf32>
      %63 = arith.subf %61, %62 : vector<2x8xf32>
      %64 = math.exp %63 : vector<2x8xf32>
      %65 = vector.broadcast %58 : vector<2x1xf32> to vector<2x8xf32>
      %66 = arith.mulf %64, %65 : vector<2x8xf32>
      %c0_39 = arith.constant 0 : index
      %c0_40 = arith.constant 0 : index
      %67 = vector.load %arg9[%c0_39, %c0_40] : memref<2x8xf32, #tpu.memory_space<vmem>>, vector<2x8xf32>
      tpu.vector_store %arg9[%c0_39, %c0_40], %66 {strides = array<i32>} : memref<2x8xf32, #tpu.memory_space<vmem>>, vector<2x8xf32>,
      %c0_41 = arith.constant 0 : index
      %c0_42 = arith.constant 0 : index
      %68 = vector.load %arg14[%c0_41, %c0_42] : memref<2x32xf32, #tpu.memory_space<vmem>>, vector<2x32xf32>
      %69 = vector.broadcast %58 : vector<2x1xf32> to vector<2x32xf32>
      %70 = arith.mulf %68, %69 : vector<2x32xf32>
      %c0_43 = arith.constant 0 : index
      %c0_44 = arith.constant 0 : index
      %71 = vector.load %arg10[%c0_43, %c0_44] : memref<2x32xf32, #tpu.memory_space<vmem>>, vector<2x32xf32>
      tpu.vector_store %arg10[%c0_43, %c0_44], %70 {strides = array<i32>} : memref<2x32xf32, #tpu.memory_space<vmem>>, vector<2x32xf32>,
    } else {
    }
    return
  }
  func.func @transform_0(%arg0: i32, %arg1: i32) -> (i32, i32, i32) {
    %c0_i32 = arith.constant 0 : i32
    %c0_i32_0 = arith.constant 0 : i32
    return %arg0, %arg1, %c0_i32 : i32, i32, i32
  }
  func.func @transform_1(%arg0: i32, %arg1: i32) -> (i32, i32) {
    %c0_i32 = arith.constant 0 : i32
    %c0_i32_0 = arith.constant 0 : i32
    return %arg0, %c0_i32 : i32, i32
  }
  func.func @transform_2(%arg0: i32, %arg1: i32) -> (i32, i32) {
    %c0_i32 = arith.constant 0 : i32
    %c0_i32_0 = arith.constant 0 : i32
    %c0_i32_1 = arith.constant 0 : i32
    return %c0_i32, %c0_i32_0 : i32, i32
  }
  func.func @transform_3(%arg0: i32, %arg1: i32) -> (i32, i32) {
    %c0_i32 = arith.constant 0 : i32
    %c0_i32_0 = arith.constant 0 : i32
    %c0_i32_1 = arith.constant 0 : i32
    return %c0_i32, %c0_i32_0 : i32, i32
  }
  func.func @transform_4(%arg0: i32, %arg1: i32) -> (i32, i32) {
    %c0_i32 = arith.constant 0 : i32
    %c0_i32_0 = arith.constant 0 : i32
    %c0_i32_1 = arith.constant 0 : i32
    return %c0_i32, %c0_i32_0 : i32, i32
  }
  func.func @transform_5(%arg0: i32, %arg1: i32) -> (i32, i32) {
    %c0_i32 = arith.constant 0 : i32
    %c0_i32_0 = arith.constant 0 : i32
    %c0_i32_1 = arith.constant 0 : i32
    return %c0_i32, %c0_i32_0 : i32, i32
  }
  func.func @transform_6(%arg0: i32, %arg1: i32) -> (i32, i32) {
    %c0_i32 = arith.constant 0 : i32
    %c0_i32_0 = arith.constant 0 : i32
    %c0_i32_1 = arith.constant 0 : i32
    return %c0_i32, %c0_i32_0 : i32, i32
  }
  func.func @transform_7(%arg0: i32, %arg1: i32) -> (i32, i32) {
    %c0_i32 = arith.constant 0 : i32
    %c0_i32_0 = arith.constant 0 : i32
    return %arg0, %c0_i32 : i32, i32
  }
  func.func @transform_8(%arg0: i32, %arg1: i32) -> (i32, i32) {
    %c0_i32 = arith.constant 0 : i32
    %c0_i32_0 = arith.constant 0 : i32
    return %arg0, %c0_i32 : i32, i32
  }
}

</mosaic_0001>

<bundles_post_ra>
// kernel: tpu_custom_call.1
= control target key start
LH: loop header
LB: loop body
LE: loop exit
PB: predicated region body
PF: predicated region fallthrough
CT: control target
= control target key end

     0   :  { %s614_s0 = inlined_call_operand.hbm [shape: f32[2,8,32], index: 0, kind: input, shape index: {}]   ;;  %s615_s1 = inlined_call_operand.vmem [shape: f32[2,16], index: 1, kind: input, shape index: {}]   ;;  %s616_s2 = inlined_call_operand.hbm [shape: f32[32,32], index: 2, kind: input, shape index: {}]   ;;  %s617_s3 = inlined_call_operand.hbm [shape: f32[16,32], index: 3, kind: input, shape index: {}]   ;;  %s618_s4 = inlined_call_operand.vmem [shape: f32[1,32], index: 4, kind: input, shape index: {}]   ;;  %s619_s5 = inlined_call_operand.vmem [shape: f32[1,32], index: 5, kind: input, shape index: {}]   ;;  %s620_s6 = inlined_call_operand.<no memory space> [shape: f32[1,1], index: 6, kind: input, shape index: {}]   ;;  %s621_s7 = inlined_call_operand.hbm [shape: f32[2,8], index: 7, kind: output, shape index: {0}]   ;;  %s622_s8 = inlined_call_operand.hbm [shape: f32[2,32], index: 8, kind: output, shape index: {1}]  }
   0x1   :  { %v14_v0 = vstv %s620_s6 }
   0x2   :  { %15 = vst [vmem:[#allocation7] sm:$0x1] %v14_v0 }
   0x3   :  { %16 = vsyncpa [#allocation9], 0 }
   0x4   :  { %17 = vsyncpa [#allocation12], 0 }
   0x5   :  { %18 = vsyncpa [#allocation10], 0 }
   0x6   :  { %19 = vsyncpa [#allocation16], 0  ;;  %s39_s9 = sshll.u32 %s616_s2, 4  ;;  %s503_s10 = smov [#allocation11]   ;;  %s40_s9 = int_to_ptr.hbm [resolvable:$true] %s39_s9 }
   0x7   :  { %s41_s11 = sshll.u32 %s503_s10, 4  ;;  %s24_s14 = sshll.u32 %s614_s0, 4  ;;  %s42_s11 = int_to_ptr.vmem [resolvable:$true] %s41_s11  ;;  %s25_s14 = int_to_ptr.hbm [resolvable:$true] %s24_s14 }
   0x8   :  { %s504_s15 = smov 128   ;;  %s505_s16 = smov 8  }
   0x9   :  { %47 = dma.hbm_to_vmem [thread:$0]  %s40_s9, 512, %s42_s11, [#allocation12], %s504_s15, %s504_s15, %s505_s16  }
   0xa   :  { %s506_s6 = smov [#allocation8]   ;;  %s52_s20 = sshll.u32 %s617_s3, 4  ;;  %s53_s20 = int_to_ptr.hbm [resolvable:$true] %s52_s20 }
   0xb   :  { %s26_s17 = sshll.u32 %s506_s6, 4  ;;  %s507_s2 = smov [#allocation13]   ;;  %s27_s17 = int_to_ptr.vmem [resolvable:$true] %s26_s17 }
   0xc   :  { %32 = dma.hbm_to_vmem [thread:$0]  %s25_s14, 256, %s27_s17, [#allocation9], %s504_s15, %s504_s15, %s505_s16  }
   0xd   :  { %s54_s21 = sshll.u32 %s507_s2, 4  ;;  %s55_s21 = int_to_ptr.vmem [resolvable:$true] %s54_s21 }
   0xe   :  { %60 = dma.hbm_to_vmem [thread:$0]  %s53_s20, 256, %s55_s21, [#allocation12], %s504_s15, %s504_s15, %s505_s16  }
   0xf   :  { %495 = dma.done.wait [#allocation9], 256  }
  0x10   :  { %496 = vsyncadd [#allocation9], 4294967040 }
  0x11   :  { %497 = dma.done.wait [#allocation12], 768  }
  0x12   :  { %498 = vsyncadd [#allocation12], 4294966528  ;;  %v85_v1 = vld [vmem:[#allocation13 + $0x8] sm:$0xff]  ;;  %v84_v2 = vld [vmem:[#allocation13] sm:$0xff]  ;;  %vm90_vm0 = vcmask 130048   ;;  %vm126_vm1 = vcmask 261120   ;;  %v190_v33 = vlaneseq }
  0x13   :  { %108 = vmatpush.msra.mxu0 %v85_v1  ;;  %v83_v3 = vld [vmem:[%s615_s1] sm:$0x3]  ;;  %v125_v4 = vld [vmem:[#allocation11 + $0x18] sm:$0xff]  ;;  %v124_v5 = vld [vmem:[#allocation11 + $0x10] sm:$0xff]  ;;  %vm114_vm2 = vcmask 254976   ;;  %v508_v10 = vmov 0.0  }
  0x14   :  { %341 = vmatpush.msra.mxu2 %v125_v4  ;;  %145 = vmatpush.msra.mxu1 %v125_v4  ;;  %v123_v6 = vld [vmem:[#allocation11 + $0x8] sm:$0xff]  ;;  %v122_v7 = vld [vmem:[#allocation11] sm:$0xff]  ;;  %v573_v8 = vld [vmem:[#allocation8 + $0x8] sm:$0xff]  ;;  %119 = vst.msk [vmem:[#allocation5] sm:$0x3] %vm114_vm2, %v508_v10  ;;  %v509_v11 = vmov 0  }
  0x15   :  { %109 = vmatpush.msra.mxu0 %v84_v2  ;;  %v575_v9 = vld [vmem:[#allocation8] sm:$0xff]  ;;  %355 = vset.pattern.permute.xlu1 %v509_v11  ;;  %v360_v12 = vld [vmem:[#allocation7] ss:$0 sm:$0xff]  ;;  %v358_v13 = vld [vmem:[%s618_s4] ss:$0 sm:$0xff]  ;;  %vm116_vm3 = vcmask 1024  }
  0x16   :  { %338 = vmatmul.msk.f32.vlgmr.msra.gmra.mxu0 %vm90_vm0, %v83_v3  ;;  %342 = vmatpush.msra.mxu2 %v124_v5  ;;  %v359_v24 = vld [vmem:[%s619_s5] ss:$0 sm:$0xff]  ;;  %v510_v31 = vmov -inf   ;;  %118 = vst.msk [vmem:[#allocation4] sm:$0x3] %vm116_vm3, %v508_v10  ;;  %v191_v35 = vand.u32 127, %v190_v33 }
  0x17   :  { %146 = vmatpush.msra.mxu1 %v124_v5  ;;  %356 = vset.pattern.permute.xlu2 %v509_v11  ;;  %117 = vst.msk [vmem:[#allocation3] sm:$0x3] %vm116_vm3, %v510_v31  ;;  %vm194_vm4 = vcmask 1041409   ;;  %vm199_vm5 = vcmask 58368   ;;  %s511_s4 = smov [#allocation14]   ;;  %s311_s27 = sshll.u32 %s621_s7, 4  ;;  %s312_s27 = int_to_ptr.hbm [resolvable:$true] %s311_s27 }
  0x18   :  { %343 = vmatpush.msra.mxu2 %v123_v6  ;;  %357 = vset.pattern.permute.xlu0 %v509_v11  ;;  %s309_s5 = sshll.u32 %s511_s4, 4  ;;  %s512_s28 = smov [#allocation15]   ;;  %s310_s5 = int_to_ptr.vmem [resolvable:$true] %s309_s5 }
  0x19   :  { %147 = vmatpush.msra.mxu1 %v123_v6  ;;  %183 = vperm.xlu1 %355, %v360_v12   ;;  %s320_s29 = sshll.u32 %s512_s28, 4  ;;  %s322_s10 = sshll.u32 %s622_s8, 4  ;;  %s321_s29 = int_to_ptr.vmem [resolvable:$true] %s320_s29  ;;  %s323_s10 = int_to_ptr.hbm [resolvable:$true] %s322_s10 }
  0x1a   :  { %344 = vmatpush.msra.mxu2 %v122_v7 }
  0x1b   :  { %340 = vmatmul.msk.f32.vlgmr.msra.gmra.mxu2 %vm126_vm1, %v573_v8  ;;  %148 = vmatpush.msra.mxu1 %v122_v7 }
  0x1c   :  { %339 = vmatmul.msk.f32.vlgmr.msra.gmra.mxu1 %vm126_vm1, %v575_v9 }
  0x1e   :  { %v201_v43 = vld [vmem:[#allocation3] sm:$0x3] }
  0x8b   :  { %v184_v34 = vpop.permute.xlu1 %183 }
  0x93   :  { %v111_v14 = vpop.f32.mrf.mxu0 }
  0x94   :  { %v112_v15 = vadd.f32 %v358_v13, %v111_v14 }
  0x96   :  { %115 = vst.msk [vmem:[#allocation2] sm:$0x3] %vm114_vm2, %v112_v15  ;;  %v243_v15 = vld [vmem:[#allocation5] sm:$0x3] }
  0x99   :  { %v150_v16 = vpop.f32.mrf.mxu1 }
  0x9d   :  { %v156_v17 = vld [vmem:[#allocation2] sm:$0x3] }
  0x9e   :  { %v159_v18 = vperm.slane %v156_v17, 0  ;;  %v158_v19 = vrot.slane %v156_v17, 1  ;;  %v153_v20 = vpop.f32.mrf.mxu2 }
  0xa0   :  { %v163_v21 = vadd.f32 %v159_v18, %v150_v16  ;;  %v160_v22 = vperm.slane %v158_v19, 0 }
  0xa2   :  { %361 = vtanh.f32 %v163_v21  ;;  %v164_v23 = vadd.f32 %v160_v22, %v153_v20  ;;  %v223_v22 = vld [vmem:[#allocation4] sm:$0x3] }
  0xa4   :  { %363 = vtanh.f32 %v164_v23 }
  0xa8   :  { %v362_v25 = vpop.eup %361 }
  0xa9   :  { %v171_v26 = vmul.f32 %v362_v25, %v359_v24 }
  0xaa   :  { %v364_v28 = vpop.eup %363 }
  0xab   :  { %v173_v27 = vsel %vm126_vm1, %v171_v26, 0.0  ;;  %v172_v29 = vmul.f32 %v364_v28, %v359_v24 }
  0xac   :  { %174 = vadd.xlane.f32.xlu0 %v173_v27 }
  0xad   :  { %v176_v30 = vsel %vm126_vm1, %v172_v29, 0.0 }
  0xb4   :  { %177 = vadd.xlane.f32.xlu0 %v176_v30 }
 0x11f   :  { %v175_v32 = vpop.xlane.xlu0 %174 }
 0x120   :  { %v186_v36 = vadd.f32 %v184_v34, %v175_v32 }
 0x122   :  { %v192_v39 = vperm.slane %v186_v36, %v191_v35 }
 0x127   :  { %v178_v37 = vpop.xlane.xlu0 %177 }
 0x128   :  { %v187_v38 = vadd.f32 %v184_v34, %v178_v37 }
 0x12a   :  { %v193_v40 = vperm.slane %v187_v38, %v191_v35 }
 0x12c   :  { %v195_v41 = vsel %vm194_vm4, %v193_v40, %v192_v39 }
 0x12d   :  { %v202_v42 = vsel %vm199_vm5, %v195_v41, -inf  ;;  %200 = vst.msk [vmem:[#allocation6] sm:$0x3] %vm199_vm5, %v195_v41 }
 0x12e   :  { %203 = vmax.xlane.f32.xlu1 %v202_v42 }
 0x134   :  { %v285_v32 = vld [vmem:[#allocation6] sm:$0x3] }
 0x1a1   :  { %v204_v44 = vpop.xlane.xlu1 %203 }
 0x1a2   :  { %v205_v45 = vmax.f32 %v201_v43, %v204_v44 }
 0x1a4   :  { %v206_v46 = vsub.f32 %v201_v43, %v205_v45  ;;  %275 = vst.msk [vmem:[#allocation3] sm:$0x3] %vm116_vm3, %v205_v45  ;;  %211 = vperm.xlu2 %356, %v205_v45  }
 0x1a6   :  { %v207_v47 = vmul.f32 1.442695, %v206_v46 }
 0x1a8   :  { %365 = vpow2.f32 %v207_v47 }
 0x1ab   :  { %v284_v58 = vld [vmem:[#allocation3] sm:$0x3] }
 0x1ae   :  { %v366_v48 = vpop.eup %365 }
 0x1af   :  { %246 = vperm.xlu1 %355, %v366_v48   ;;  %v224_v23 = vmul.f32 %v366_v48, %v223_v22 }
 0x1fe   :  { %v212_v49 = vpop.permute.xlu2 %211 }
 0x1ff   :  { %v213_v50 = vperm.slane %v212_v49, 0  ;;  %v214_v51 = vperm.slane %v212_v49, 1 }
 0x201   :  { %v217_v52 = vsub.f32 %v186_v36, %v213_v50  ;;  %v218_v53 = vsub.f32 %v187_v38, %v214_v51 }
 0x203   :  { %v219_v54 = vmul.f32 1.442695, %v217_v52  ;;  %v221_v55 = vmul.f32 1.442695, %v218_v53 }
 0x205   :  { %367 = vpow2.f32 %v219_v54 }
 0x206   :  { %369 = vpow2.f32 %v221_v55 }
 0x20b   :  { %v368_v56 = vpop.eup %367 }
 0x20c   :  { %v370_v57 = vpop.eup %369  ;;  %228 = vperm.xlu2 %356, %v368_v56  }
 0x20d   :  { %231 = vperm.xlu0 %357, %v370_v57  }
 0x215   :  { %288 = vperm.xlu0 %357, %v284_v58  }
 0x221   :  { %v247_v16 = vpop.permute.xlu1 %246 }
 0x266   :  { %v229_v59 = vpop.permute.xlu2 %228 }
 0x267   :  { %v252_v60 = vmul.f32 %v229_v59, %v575_v9  ;;  %v233_v1 = vperm.slane %v229_v59, %v191_v35 }
 0x269   :  { %v254_v61 = vsel %vm126_vm1, %v252_v60, 0.0 }
 0x26a   :  { %v255_v62 = vrot.slane %v254_v61, 4 }
 0x26c   :  { %v256_v63 = vadd.f32 %v255_v62, %v254_v61 }
 0x26e   :  { %v257_v4 = vrot.slane %v256_v63, 2 }
 0x270   :  { %v258_v11 = vadd.f32 %v257_v4, %v256_v63 }
 0x272   :  { %v259_v13 = vrot.slane %v258_v11, 1 }
 0x274   :  { %v260_v18 = vadd.f32 %v259_v13, %v258_v11 }
 0x27f   :  { %v232_v0 = vpop.permute.xlu0 %231 }
 0x280   :  { %v234_v2 = vperm.slane %v232_v0, %v191_v35  ;;  %v253_v3 = vmul.f32 %v232_v0, %v573_v8  ;;  %v249_v8 = vmul.f32 %v247_v16, %v243_v15 }
 0x282   :  { %v261_v5 = vsel %vm126_vm1, %v253_v3, 0.0  ;;  %v235_v6 = vsel %vm194_vm4, %v234_v2, %v233_v1 }
 0x283   :  { %v262_v7 = vrot.slane %v261_v5, 4  ;;  %v237_v10 = vsel %vm199_vm5, %v235_v6, 0.0 }
 0x284   :  { %238 = vadd.xlane.f32.xlu2 %v237_v10 }
 0x285   :  { %v263_v9 = vadd.f32 %v262_v7, %v261_v5 }
 0x287   :  { %v264_v12 = vrot.slane %v263_v9, 2  ;;  %v289_v31 = vpop.permute.xlu0 %288 }
 0x288   :  { %v291_v33 = vsub.f32 %v285_v32, %v289_v31 }
 0x289   :  { %v265_v14 = vadd.f32 %v264_v12, %v263_v9 }
 0x28a   :  { %v292_v34 = vmul.f32 1.442695, %v291_v33 }
 0x28b   :  { %v266_v17 = vrot.slane %v265_v14, 1 }
 0x28d   :  { %v267_v19 = vadd.f32 %v266_v17, %v265_v14 }
 0x28f   :  { %v270_v20 = vsel %vm194_vm4, %v267_v19, %v260_v18 }
 0x290   :  { %v272_v21 = vadd.f32 %v270_v20, %v249_v8 }
 0x292   :  { %274 = vst.msk [vmem:[#allocation5] sm:$0x3] %vm114_vm2, %v272_v21 }
 0x299   :  { %v301_v36 = vld [vmem:[#allocation5] sm:$0x3] }
 0x2f7   :  { %v239_v24 = vpop.xlane.xlu2 %238 }
 0x2f8   :  { %v240_v25 = vadd.f32 %v239_v24, %v224_v23 }
 0x2fa   :  { %242 = vst.msk [vmem:[#allocation4] sm:$0x3] %vm116_vm3, %v240_v25 }
 0x301   :  { %v279_v26 = vld [vmem:[#allocation4] sm:$0x3] }
 0x302   :  { %371 = vrcp.f32 %v279_v26 }
 0x303   :  { %373 = vpow2.f32 %v292_v34 }
 0x308   :  { %v372_v27 = vpop.eup %371 }
 0x309   :  { %v281_v28 = vmul.f32 %v372_v27, %v279_v26  ;;  %v374_v35 = vpop.eup %373 }
 0x30b   :  { %v282_v29 = vsub.f32 2.0, %v281_v28 }
 0x30d   :  { %v283_v30 = vmul.f32 %v372_v27, %v282_v29 }
 0x30f   :  { %296 = vperm.xlu2 %356, %v283_v30  }
 0x369   :  { %v297_v37 = vpop.permute.xlu2 %296 }
 0x36a   :  { %v299_v38 = vmul.f32 %v374_v35, %v297_v37  ;;  %v302_v39 = vmul.f32 %v301_v36, %v297_v37 }
 0x36c   :  { %300 = vst.msk [vmem:[#allocation14] sm:$0x3] %vm199_vm5, %v299_v38 }
 0x36d   :  { %303 = vst.msk [vmem:[#allocation15] sm:$0x3] %vm114_vm2, %v302_v39  ;;  %314 = dma.vmem_to_hbm [thread:$0]  %s310_s5, 32, %s312_s27, [#allocation10]  }
 0x36e   :  { %325 = dma.vmem_to_hbm [thread:$0]  %s321_s29, 32, %s323_s10, [#allocation16]  }
 0x36f   :  { %499 = dma.done.wait [#allocation10], 32  }
 0x370   :  { %500 = vsyncadd [#allocation10], 4294967264 }
 0x371   :  { %501 = dma.done.wait [#allocation16], 32  }
 0x372   :  { %502 = vsyncadd [#allocation16], 4294967264 }
 0x373   :  { %334 = vsyncpa [#allocation9], 1 }
 0x374   :  { %335 = vsyncpa [#allocation12], 1 }
 0x375   :  { %336 = vsyncpa [#allocation10], 1 }
 0x376   :  { %337 = vsyncpa [#allocation16], 1 }

</bundles_post_ra>
